<compile_context>
chip_gen: v7x
topology: tpu7x:2x2x1
jax: 0.10.0
libtpu: 0.0.40
codegen_flags: <defaults>
</compile_context>

<pallas_src>
import numpy as np
import jax
import jax.numpy as jnp
from jax.experimental import pallas as pl
from jax.experimental.pallas import tpu as pltpu

EPS = 1e-5
LANE = 128
MIN_TILES = 4      # keep >= 4 row tiles per pallas_call (megacore / pipelining)
ROW_ALIGN = 16     # bf16 packs 16 rows per vreg; also satisfies the 8-row rule


# ---------------------------------------------------------------------------
# Per-generation config / tiling helpers
# ---------------------------------------------------------------------------
def _tpu_vmem_config():
    """(vmem_limit_bytes, tile_vmem_budget_bytes, tile_rows_cap)."""
    try:
        kind = jax.devices()[0].device_kind.lower()
    except Exception:
        kind = ""
    if ("v5" in kind) or ("v6" in kind):
        # 128 MiB VMEM per core: bigger tiles amortize per-grid-step overhead.
        return 96 * 1024 * 1024, 72 * 1024 * 1024, 2048
    # Conservative default that fits v7x's 64 MiB / TC.
    return 48 * 1024 * 1024, 36 * 1024 * 1024, 1024


def _cdiv(a, b):
    return (a + b - 1) // b


def _round_up(x, m):
    return _cdiv(x, m) * m


def _choose_tm(M, K, Cpo, bpe_in, bpe_y, vmem_budget, rows_cap):
    """Largest 16-row-aligned tile that fits the VMEM budget, small enough for >=4 tiles."""
    fixed = 2 * K * Cpo * bpe_in + 4 * Cpo * 4           # dbl-buffered weight + stats
    per_row = 2 * (K * bpe_in + Cpo * bpe_y)             # dbl-buffered patch + y tiles
    tm_budget = max((vmem_budget - fixed) // per_row, ROW_ALIGN)
    tm_small = _round_up(_cdiv(M, MIN_TILES), ROW_ALIGN)  # guarantee >= MIN_TILES tiles
    tm = max(ROW_ALIGN, min(tm_budget, rows_cap, tm_small))
    return int(tm // ROW_ALIGN * ROW_ALIGN)


# ---------------------------------------------------------------------------
# Pallas kernels
# ---------------------------------------------------------------------------
def _conv_stats_kernel(p_ref, w_ref, y_ref, stats_ref):
    """Per-tile conv-as-matmul (f32 accumulate); store y (possibly bf16) + (sum, sumsq)."""
    y = jnp.dot(p_ref[...], w_ref[...], preferred_element_type=jnp.float32)
    y_ref[...] = y.astype(y_ref.dtype)
    # TODO(synk): route these reductions through the MXU (ones @ y) if a bundle
    #             dump shows the XLU saturating.
    stats_ref[...] = jnp.concatenate(
        [jnp.sum(y, axis=0, keepdims=True),
         jnp.sum(y * y, axis=0, keepdims=True)], axis=0)        # (2, C) f32


def _affine_relu_kernel(y_ref, s_ref, b_ref, o_ref):
    """out = relu(y * scale + shift) per tile (BN1-apply pass)."""
    o_ref[...] = jnp.maximum(y_ref[...] * s_ref[...] + b_ref[...],
                             0.0).astype(o_ref.dtype)


def _affine_add_relu_kernel(y_ref, r_ref, s_ref, b_ref, rs_ref, rb_ref, o_ref):
    """out = relu(y*scale+shift + res*rscale+rshift) (BN2 + shortcut-BN + add + relu)."""
    main = y_ref[...] * s_ref[...] + b_ref[...]
    res = r_ref[...] * rs_ref[...] + rb_ref[...]
    o_ref[...] = jnp.maximum(main + res, 0.0).astype(o_ref.dtype)


# ---------------------------------------------------------------------------
# pallas_call wrappers (tiled over M, one "parallel" grid axis)
# ---------------------------------------------------------------------------
def conv_matmul_stats(p, w, *, tm, y_dtype, cp):
    Mp, K = p.shape
    Cpo = w.shape[1]
    nt = Mp // tm
    # Note: the weight index_map is constant, so Pallas fetches it once; on v7x,
    # pipeline_mode=pl.Buffered(1) on the weight spec would save one extra buffer.
    y, stats = pl.pallas_call(
        _conv_stats_kernel,
        out_shape=(jax.ShapeDtypeStruct((Mp, Cpo), y_dtype),
                   jax.ShapeDtypeStruct((nt, 2, Cpo), jnp.float32)),
        grid=(nt,),
        in_specs=[pl.BlockSpec((tm, K), lambda i: (i, 0)),
                  pl.BlockSpec((K, Cpo), lambda i: (0, 0))],    # weight stays resident
        out_specs=(pl.BlockSpec((tm, Cpo), lambda i: (i, 0)),
                   pl.BlockSpec((None, 2, Cpo), lambda i: (i, 0, 0))),
        compiler_params=cp,
    )(p, w)
    return y, stats


def affine_relu(y, scale, shift, *, tm, out_dtype, cp):
    Mp, C = y.shape
    nt = Mp // tm
    return pl.pallas_call(
        _affine_relu_kernel,
        out_shape=jax.ShapeDtypeStruct((Mp, C), out_dtype),
        grid=(nt,),
        in_specs=[pl.BlockSpec((tm, C), lambda i: (i, 0)),
                  pl.BlockSpec((1, C), lambda i: (0, 0)),
                  pl.BlockSpec((1, C), lambda i: (0, 0))],
        out_specs=pl.BlockSpec((tm, C), lambda i: (i, 0)),
        compiler_params=cp,
    )(y, scale, shift)


def affine_add_relu(y, res, scale, shift, rscale, rshift, *, tm, cp):
    Mp, C = y.shape
    nt = Mp // tm
    return pl.pallas_call(
        _affine_add_relu_kernel,
        out_shape=jax.ShapeDtypeStruct((Mp, C), jnp.float32),
        grid=(nt,),
        in_specs=[pl.BlockSpec((tm, C), lambda i: (i, 0)),
                  pl.BlockSpec((tm, C), lambda i: (i, 0)),      # residual streams per tile
                  pl.BlockSpec((1, C), lambda i: (0, 0)),
                  pl.BlockSpec((1, C), lambda i: (0, 0)),
                  pl.BlockSpec((1, C), lambda i: (0, 0)),
                  pl.BlockSpec((1, C), lambda i: (0, 0))],
        out_specs=pl.BlockSpec((tm, C), lambda i: (i, 0)),
        compiler_params=cp,
    )(y, res, scale, shift, rscale, rshift)


# ---------------------------------------------------------------------------
# Host-side glue: padding, im2col (K-packed), BN finalize, forward
# ---------------------------------------------------------------------------
def _pad_axis(a, axis, target):
    pad = target - a.shape[axis]
    if pad == 0:
        return a
    widths = [(0, 0)] * a.ndim
    widths[axis] = (0, pad)
    return jnp.pad(a, widths)


def _pad_rows(a, target_rows):
    return _pad_axis(a, 0, target_rows)


def _pad_vec(v, c):
    return _pad_axis(v.reshape(-1).astype(jnp.float32), 0, c)


def _pack_weight(w_hwio, kp, cop):
    """(kh,kw,ci,co) HWIO -> flatten (tap,ci) -> zero-pad to (kp, cop)."""
    kh, kw, ci, co = w_hwio.shape
    w = w_hwio.reshape(kh * kw * ci, co)
    return jnp.pad(w, ((0, kp - kh * kw * ci), (0, cop - co)))


def im2col3x3(x_nhwc, stride):
    """3x3 patches with padding=1, columns ordered (tap, channel). (N*Ho*Wo, 9*C)."""
    N, H, W, C = x_nhwc.shape
    xp = jnp.pad(x_nhwc, ((0, 0), (1, 1), (1, 1), (0, 0)))
    Ho = (H - 1) // stride + 1
    Wo = (W - 1) // stride + 1
    taps = []
    for dh in range(3):
        for dw in range(3):
            taps.append(xp[:, dh:dh + (Ho - 1) * stride + 1:stride,
                              dw:dw + (Wo - 1) * stride + 1:stride, :])
    p = jnp.stack(taps, axis=-2)            # (N, Ho, Wo, 9, C)
    return p.reshape(N * Ho * Wo, 9 * C)


def finalize_bn(stats, m, gamma, beta):
    """Reduce per-tile (sum, sumsq) partials -> BN affine (scale, shift), biased var."""
    s = jnp.sum(stats[:, 0, :], axis=0)
    ss = jnp.sum(stats[:, 1, :], axis=0)
    mean = s / m
    # NOTE: E[x^2]-E[x]^2 in f32 can cancel for large-magnitude activations; the
    # max(.,0) guard keeps it non-negative.  TODO(synk): accumulate shifted sums.
    var = jnp.maximum(ss / m - mean * mean, 0.0)
    scale = gamma * jax.lax.rsqrt(var + EPS)
    shift = beta - mean * scale
    return scale.reshape(1, -1), shift.reshape(1, -1)


def residual_block_forward(x_nchw, params, stride,
                           mxu_dtype=jnp.bfloat16, tile_rows=None):
    # Module contract is NCHW (PyTorch); keep bracketing transposes here.
    x = jnp.transpose(x_nchw, (0, 2, 3, 1)).astype(jnp.float32)   # NCHW -> NHWC
    N, H, W, Cin = x.shape
    Cout = params["w1"].shape[-1]
    Cpo = _round_up(Cout, LANE)

    Ho = (H - 1) // stride + 1
    Wo = (W - 1) // stride + 1
    M = N * Ho * Wo
    need_proj = (stride != 1) or (Cin != Cout)

    # K-packed reduction dims (pad once after flattening tap*channel).
    K1 = _round_up(9 * Cin, LANE)
    K2 = _round_up(9 * Cout, LANE)
    Ksc = _round_up(Cin, LANE)

    vmem_limit, vmem_budget, rows_cap = _tpu_vmem_config()
    if tile_rows is not None:
        rows_cap = int(tile_rows)
    bpe = jnp.dtype(mxu_dtype).itemsize
    Kmax = max(K1, K2, Ksc if need_proj else 0)
    tm = _choose_tm(M, Kmax, Cpo, bpe, bpe, vmem_budget, rows_cap)
    Mp = _round_up(M, tm)

    cp = pltpu.CompilerParams(dimension_semantics=("parallel",),
                              vmem_limit_bytes=vmem_limit)

    x_mxu = x.astype(mxu_dtype)
    w1 = _pack_weight(params["w1"], K1, Cpo).astype(mxu_dtype)
    w2 = _pack_weight(params["w2"], K2, Cpo).astype(mxu_dtype)
    g1, b1 = _pad_vec(params["g1"], Cpo), _pad_vec(params["b1"], Cpo)
    g2, b2 = _pad_vec(params["g2"], Cpo), _pad_vec(params["b2"], Cpo)

    # ---- conv1 -> stats -> BN1 + ReLU ------------------------------------
    p1 = _pad_rows(_pad_axis(im2col3x3(x_mxu, stride), 1, K1), Mp)
    y1, st1 = conv_matmul_stats(p1, w1, tm=tm, y_dtype=mxu_dtype, cp=cp)
    s1, sh1 = finalize_bn(st1, M, g1, b1)
    out1 = affine_relu(y1, s1, sh1, tm=tm, out_dtype=mxu_dtype, cp=cp)

    # ---- shortcut ---------------------------------------------------------
    if need_proj:
        wsc = _pack_weight(params["wsc"], Ksc, Cpo).astype(mxu_dtype)
        xs = x_mxu[:, ::stride, ::stride, :].reshape(M, Cin)
        xs = _pad_rows(_pad_axis(xs, 1, Ksc), Mp)
        res, stsc = conv_matmul_stats(xs, wsc, tm=tm, y_dtype=mxu_dtype, cp=cp)
        rs, rsh = finalize_bn(stsc, M, _pad_vec(params["gsc"], Cpo),
                              _pad_vec(params["bsc"], Cpo))   # BN applied in final kernel
    else:
        res = _pad_rows(_pad_axis(x.reshape(M, Cin), 1, Cpo), Mp)   # identity, full f32
        rs = jnp.ones((1, Cpo), jnp.float32)
        rsh = jnp.zeros((1, Cpo), jnp.float32)

    # ---- conv2 -> stats -> BN2 + shortcut-BN + add + ReLU -----------------
    out1_nhwc = out1[:M, :Cout].reshape(N, Ho, Wo, Cout)   # drop row/lane padding
    p2 = _pad_rows(_pad_axis(im2col3x3(out1_nhwc, 1), 1, K2), Mp)
    y2, st2 = conv_matmul_stats(p2, w2, tm=tm, y_dtype=mxu_dtype, cp=cp)
    s2, sh2 = finalize_bn(st2, M, g2, b2)
    out = affine_add_relu(y2, res, s2, sh2, rs, rsh, tm=tm, cp=cp)

    out = out[:M, :Cout].reshape(N, Ho, Wo, Cout)
    return jnp.transpose(out, (0, 3, 1, 2))                 # back to NCHW


residual_block = jax.jit(residual_block_forward,
                         static_argnames=("stride", "mxu_dtype", "tile_rows"))


# ---------------------------------------------------------------------------
# Pure-JAX reference (lax.conv) for correctness checking
# ---------------------------------------------------------------------------
def ref_forward(x_nchw, params, stride):
    def conv(x, w_hwio, s, pad):
        return jax.lax.conv_general_dilated(
            x, w_hwio, (s, s), pad, dimension_numbers=("NCHW", "HWIO", "NCHW"))

    def bn(y, g, b):
        mean = y.mean(axis=(0, 2, 3), keepdims=True)
        var = ((y - mean) ** 2).mean(axis=(0, 2, 3), keepdims=True)
        return ((y - mean) * jax.lax.rsqrt(var + EPS)
                * g.reshape(1, -1, 1, 1) + b.reshape(1, -1, 1, 1))

    out = jax.nn.relu(bn(conv(x_nchw, params["w1"], stride, ((1, 1), (1, 1))),
                         params["g1"], params["b1"]))
    out = bn(conv(out, params["w2"], 1, ((1, 1), (1, 1))),
             params["g2"], params["b2"])
    if "wsc" in params:
        sc = bn(conv(x_nchw, params["wsc"], stride, ((0, 0), (0, 0))),
                params["gsc"], params["bsc"])
    else:
        sc = x_nchw
    return jax.nn.relu(out + sc)


def make_params(key, cin, cout, projection):
    ks = jax.random.split(key, 10)
    params = {
        "w1": 0.2 * jax.random.normal(ks[0], (3, 3, cin, cout), jnp.float32),
        "g1": 1.0 + 0.1 * jax.random.normal(ks[1], (1, cout), jnp.float32),
        "b1": 0.1 * jax.random.normal(ks[2], (1, cout), jnp.float32),
        "w2": 0.2 * jax.random.normal(ks[3], (3, 3, cout, cout), jnp.float32),
        "g2": 1.0 + 0.1 * jax.random.normal(ks[4], (1, cout), jnp.float32),
        "b2": 0.1 * jax.random.normal(ks[5], (1, cout), jnp.float32),
    }
    if projection:
        params.update({
            "wsc": 0.2 * jax.random.normal(ks[6], (1, 1, cin, cout), jnp.float32),
            "gsc": 1.0 + 0.1 * jax.random.normal(ks[7], (1, cout), jnp.float32),
            "bsc": 0.1 * jax.random.normal(ks[8], (1, cout), jnp.float32),
        })
    return params


if __name__ == "__main__":
    key = jax.random.PRNGKey(0)
    kx, kp1, kp2 = jax.random.split(key, 3)

    # Case 1: projection shortcut (stride=2, channel change)
    N, Cin, H, W = 2, 4, 16, 16
    Cout, stride = 8, 2
    x = jax.random.normal(kx, (N, Cin, H, W), jnp.float32)
    params = make_params(kp1, Cin, Cout, projection=True)
    ref = ref_forward(x, params, stride)

    # f32 MXU path: tight check against the f32 lax.conv reference.
    out_f32 = residual_block(x, params, stride=stride, mxu_dtype=jnp.float32)
    jax.block_until_ready(out_f32)
    assert out_f32.shape == ref.shape == (N, Cout, H // stride, W // stride)
    np.testing.assert_allclose(np.asarray(out_f32), np.asarray(ref),
                               atol=2e-3, rtol=2e-3)

    # bf16 MXU operands + bf16 intermediates (default perf path): loose check.
    # (Intentional precision trade: conv outputs stored bf16; BN stats stay f32.)
    out_bf16 = residual_block(x, params, stride=stride)
    jax.block_until_ready(out_bf16)
    np.testing.assert_allclose(np.asarray(out_bf16), np.asarray(ref),
                               atol=2e-1, rtol=1e-1)

    # Case 2: identity shortcut (stride=1, same channels)
    params_id = make_params(kp2, Cin, Cin, projection=False)
    ref_id = ref_forward(x, params_id, 1)
    out_id_f32 = residual_block(x, params_id, stride=1, mxu_dtype=jnp.float32)
    jax.block_until_ready(out_id_f32)
    np.testing.assert_allclose(np.asarray(out_id_f32), np.asarray(ref_id),
                               atol=2e-3, rtol=2e-3)
    out_id_bf16 = residual_block(x, params_id, stride=1)
    jax.block_until_ready(out_id_bf16)
    np.testing.assert_allclose(np.asarray(out_id_bf16), np.asarray(ref_id),
                               atol=2e-1, rtol=1e-1)

    print("KERNEL_OK")
</pallas_src>

<mosaic_0001>
module attributes {stable_mosaic.version = 11 : i64} {
  func.func @_conv_stats_kernel(%arg0: i32, %arg1: memref<32x128xf32, #tpu.memory_space<vmem>>, %arg2: memref<128x128xf32, #tpu.memory_space<vmem>>, %arg3: memref<32x128xf32, #tpu.memory_space<vmem>>, %arg4: memref<1x2x128xf32, #tpu.memory_space<vmem>>) attributes {dimension_semantics = [#tpu.dimension_semantics<parallel>], iteration_bounds = array<i64: 4>, scalar_prefetch = 0 : i64, scratch_operands = 0 : i64, tpu.core_type = #tpu.core_type<tc>, window_params = [{transform_indices = @transform_0, window_bounds = array<i64: 32, 128>}, {pipeline_mode = #tpu.pipeline_mode<synchronous>, transform_indices = @transform_1, window_bounds = array<i64: 128, 128>}, {transform_indices = @transform_2, window_bounds = array<i64: 32, 128>}, {transform_indices = @transform_3, window_bounds = array<i64: 1, 2, 128>}]} {
    %c0 = arith.constant 0 : index
    %c0_0 = arith.constant 0 : index
    %0 = vector.load %arg1[%c0, %c0_0] : memref<32x128xf32, #tpu.memory_space<vmem>>, vector<32x128xf32>
    %c0_1 = arith.constant 0 : index
    %c0_2 = arith.constant 0 : index
    %1 = vector.load %arg2[%c0_1, %c0_2] : memref<128x128xf32, #tpu.memory_space<vmem>>, vector<128x128xf32>
    %cst = arith.constant dense<0.000000e+00> : vector<32x128xf32>
    %2 = tpu.matmul %0, %1, %cst {dimension_numbers = #tpu.dot_dimension_numbers<[1], [0], [0], [1], [0, 0, 1, 1], [], []>} : vector<32x128xf32>, vector<128x128xf32>, vector<32x128xf32> -> vector<32x128xf32>
    %c0_3 = arith.constant 0 : index
    %c0_4 = arith.constant 0 : index
    %3 = vector.load %arg3[%c0_3, %c0_4] : memref<32x128xf32, #tpu.memory_space<vmem>>, vector<32x128xf32>
    tpu.vector_store %arg3[%c0_3, %c0_4], %2 {strides = array<i32>} : memref<32x128xf32, #tpu.memory_space<vmem>>, vector<32x128xf32>,
    %cst_5 = arith.constant dense<0.000000e+00> : vector<128xf32>
    %4 = vector.multi_reduction <add>, %2, %cst_5 [0] : vector<32x128xf32> to vector<128xf32>
    %5 = vector.shape_cast %4 : vector<128xf32> to vector<1x128xf32>
    %6 = arith.mulf %2, %2 : vector<32x128xf32>
    %cst_6 = arith.constant dense<0.000000e+00> : vector<128xf32>
    %7 = vector.multi_reduction <add>, %6, %cst_6 [0] : vector<32x128xf32> to vector<128xf32>
    %8 = vector.shape_cast %7 : vector<128xf32> to vector<1x128xf32>
    %9 = tpu.concatenate %5, %8 in 0 : vector<1x128xf32>, vector<1x128xf32> -> vector<2x128xf32>
    %c0_7 = arith.constant 0 : index
    %c0_8 = arith.constant 0 : index
    %c0_9 = arith.constant 0 : index
    %10 = vector.load %arg4[%c0_7, %c0_8, %c0_9] : memref<1x2x128xf32, #tpu.memory_space<vmem>>, vector<1x2x128xf32>
    %11 = vector.shape_cast %10 : vector<1x2x128xf32> to vector<2x128xf32>
    %12 = vector.shape_cast %9 : vector<2x128xf32> to vector<1x2x128xf32>
    tpu.vector_store %arg4[%c0_7, %c0_8, %c0_9], %12 {strides = array<i32>} : memref<1x2x128xf32, #tpu.memory_space<vmem>>, vector<1x2x128xf32>,
    return
  }
  func.func @transform_0(%arg0: i32) -> (i32, i32) {
    %c0_i32 = arith.constant 0 : i32
    %c0_i32_0 = arith.constant 0 : i32
    return %arg0, %c0_i32 : i32, i32
  }
  func.func @transform_1(%arg0: i32) -> (i32, i32) {
    %c0_i32 = arith.constant 0 : i32
    %c0_i32_0 = arith.constant 0 : i32
    %c0_i32_1 = arith.constant 0 : i32
    return %c0_i32, %c0_i32_0 : i32, i32
  }
  func.func @transform_2(%arg0: i32) -> (i32, i32) {
    %c0_i32 = arith.constant 0 : i32
    %c0_i32_0 = arith.constant 0 : i32
    return %arg0, %c0_i32 : i32, i32
  }
  func.func @transform_3(%arg0: i32) -> (i32, i32, i32) {
    %c0_i32 = arith.constant 0 : i32
    %c0_i32_0 = arith.constant 0 : i32
    %c0_i32_1 = arith.constant 0 : i32
    return %arg0, %c0_i32, %c0_i32_0 : i32, i32, i32
  }
}

module attributes {stable_mosaic.version = 11 : i64} {
  func.func @_affine_relu_kernel(%arg0: i32, %arg1: memref<32x128xf32, #tpu.memory_space<vmem>>, %arg2: memref<1x128xf32, #tpu.memory_space<vmem>>, %arg3: memref<1x128xf32, #tpu.memory_space<vmem>>, %arg4: memref<32x128xf32, #tpu.memory_space<vmem>>) attributes {dimension_semantics = [#tpu.dimension_semantics<parallel>], iteration_bounds = array<i64: 4>, scalar_prefetch = 0 : i64, scratch_operands = 0 : i64, tpu.core_type = #tpu.core_type<tc>, window_params = [{transform_indices = @transform_0, window_bounds = array<i64: 32, 128>}, {pipeline_mode = #tpu.pipeline_mode<synchronous>, transform_indices = @transform_1, window_bounds = array<i64: 1, 128>}, {pipeline_mode = #tpu.pipeline_mode<synchronous>, transform_indices = @transform_2, window_bounds = array<i64: 1, 128>}, {transform_indices = @transform_3, window_bounds = array<i64: 32, 128>}]} {
    %c0 = arith.constant 0 : index
    %c0_0 = arith.constant 0 : index
    %0 = vector.load %arg1[%c0, %c0_0] : memref<32x128xf32, #tpu.memory_space<vmem>>, vector<32x128xf32>
    %c0_1 = arith.constant 0 : index
    %c0_2 = arith.constant 0 : index
    %1 = vector.load %arg2[%c0_1, %c0_2] : memref<1x128xf32, #tpu.memory_space<vmem>>, vector<1x128xf32>
    %2 = vector.broadcast %1 : vector<1x128xf32> to vector<32x128xf32>
    %3 = arith.mulf %0, %2 : vector<32x128xf32>
    %c0_3 = arith.constant 0 : index
    %c0_4 = arith.constant 0 : index
    %4 = vector.load %arg3[%c0_3, %c0_4] : memref<1x128xf32, #tpu.memory_space<vmem>>, vector<1x128xf32>
    %5 = vector.broadcast %4 : vector<1x128xf32> to vector<32x128xf32>
    %6 = arith.addf %3, %5 : vector<32x128xf32>
    %cst = arith.constant 0.000000e+00 : f32
    %7 = vector.broadcast %cst : f32 to vector<32x128xf32>
    %8 = arith.maximumf %6, %7 : vector<32x128xf32>
    %c0_5 = arith.constant 0 : index
    %c0_6 = arith.constant 0 : index
    %9 = vector.load %arg4[%c0_5, %c0_6] : memref<32x128xf32, #tpu.memory_space<vmem>>, vector<32x128xf32>
    tpu.vector_store %arg4[%c0_5, %c0_6], %8 {strides = array<i32>} : memref<32x128xf32, #tpu.memory_space<vmem>>, vector<32x128xf32>,
    return
  }
  func.func @transform_0(%arg0: i32) -> (i32, i32) {
    %c0_i32 = arith.constant 0 : i32
    %c0_i32_0 = arith.constant 0 : i32
    return %arg0, %c0_i32 : i32, i32
  }
  func.func @transform_1(%arg0: i32) -> (i32, i32) {
    %c0_i32 = arith.constant 0 : i32
    %c0_i32_0 = arith.constant 0 : i32
    %c0_i32_1 = arith.constant 0 : i32
    return %c0_i32, %c0_i32_0 : i32, i32
  }
  func.func @transform_2(%arg0: i32) -> (i32, i32) {
    %c0_i32 = arith.constant 0 : i32
    %c0_i32_0 = arith.constant 0 : i32
    %c0_i32_1 = arith.constant 0 : i32
    return %c0_i32, %c0_i32_0 : i32, i32
  }
  func.func @transform_3(%arg0: i32) -> (i32, i32) {
    %c0_i32 = arith.constant 0 : i32
    %c0_i32_0 = arith.constant 0 : i32
    return %arg0, %c0_i32 : i32, i32
  }
}

module attributes {stable_mosaic.version = 11 : i64} {
  func.func @_affine_add_relu_kernel(%arg0: i32, %arg1: memref<32x128xf32, #tpu.memory_space<vmem>>, %arg2: memref<32x128xf32, #tpu.memory_space<vmem>>, %arg3: memref<1x128xf32, #tpu.memory_space<vmem>>, %arg4: memref<1x128xf32, #tpu.memory_space<vmem>>, %arg5: memref<1x128xf32, #tpu.memory_space<vmem>>, %arg6: memref<1x128xf32, #tpu.memory_space<vmem>>, %arg7: memref<32x128xf32, #tpu.memory_space<vmem>>) attributes {dimension_semantics = [#tpu.dimension_semantics<parallel>], iteration_bounds = array<i64: 4>, scalar_prefetch = 0 : i64, scratch_operands = 0 : i64, tpu.core_type = #tpu.core_type<tc>, window_params = [{transform_indices = @transform_0, window_bounds = array<i64: 32, 128>}, {transform_indices = @transform_1, window_bounds = array<i64: 32, 128>}, {pipeline_mode = #tpu.pipeline_mode<synchronous>, transform_indices = @transform_2, window_bounds = array<i64: 1, 128>}, {pipeline_mode = #tpu.pipeline_mode<synchronous>, transform_indices = @transform_3, window_bounds = array<i64: 1, 128>}, {pipeline_mode = #tpu.pipeline_mode<synchronous>, transform_indices = @transform_4, window_bounds = array<i64: 1, 128>}, {pipeline_mode = #tpu.pipeline_mode<synchronous>, transform_indices = @transform_5, window_bounds = array<i64: 1, 128>}, {transform_indices = @transform_6, window_bounds = array<i64: 32, 128>}]} {
    %c0 = arith.constant 0 : index
    %c0_0 = arith.constant 0 : index
    %0 = vector.load %arg1[%c0, %c0_0] : memref<32x128xf32, #tpu.memory_space<vmem>>, vector<32x128xf32>
    %c0_1 = arith.constant 0 : index
    %c0_2 = arith.constant 0 : index
    %1 = vector.load %arg3[%c0_1, %c0_2] : memref<1x128xf32, #tpu.memory_space<vmem>>, vector<1x128xf32>
    %2 = vector.broadcast %1 : vector<1x128xf32> to vector<32x128xf32>
    %3 = arith.mulf %0, %2 : vector<32x128xf32>
    %c0_3 = arith.constant 0 : index
    %c0_4 = arith.constant 0 : index
    %4 = vector.load %arg4[%c0_3, %c0_4] : memref<1x128xf32, #tpu.memory_space<vmem>>, vector<1x128xf32>
    %5 = vector.broadcast %4 : vector<1x128xf32> to vector<32x128xf32>
    %6 = arith.addf %3, %5 : vector<32x128xf32>
    %c0_5 = arith.constant 0 : index
    %c0_6 = arith.constant 0 : index
    %7 = vector.load %arg2[%c0_5, %c0_6] : memref<32x128xf32, #tpu.memory_space<vmem>>, vector<32x128xf32>
    %c0_7 = arith.constant 0 : index
    %c0_8 = arith.constant 0 : index
    %8 = vector.load %arg5[%c0_7, %c0_8] : memref<1x128xf32, #tpu.memory_space<vmem>>, vector<1x128xf32>
    %9 = vector.broadcast %8 : vector<1x128xf32> to vector<32x128xf32>
    %10 = arith.mulf %7, %9 : vector<32x128xf32>
    %c0_9 = arith.constant 0 : index
    %c0_10 = arith.constant 0 : index
    %11 = vector.load %arg6[%c0_9, %c0_10] : memref<1x128xf32, #tpu.memory_space<vmem>>, vector<1x128xf32>
    %12 = vector.broadcast %11 : vector<1x128xf32> to vector<32x128xf32>
    %13 = arith.addf %10, %12 : vector<32x128xf32>
    %14 = arith.addf %6, %13 : vector<32x128xf32>
    %cst = arith.constant 0.000000e+00 : f32
    %15 = vector.broadcast %cst : f32 to vector<32x128xf32>
    %16 = arith.maximumf %14, %15 : vector<32x128xf32>
    %c0_11 = arith.constant 0 : index
    %c0_12 = arith.constant 0 : index
    %17 = vector.load %arg7[%c0_11, %c0_12] : memref<32x128xf32, #tpu.memory_space<vmem>>, vector<32x128xf32>
    tpu.vector_store %arg7[%c0_11, %c0_12], %16 {strides = array<i32>} : memref<32x128xf32, #tpu.memory_space<vmem>>, vector<32x128xf32>,
    return
  }
  func.func @transform_0(%arg0: i32) -> (i32, i32) {
    %c0_i32 = arith.constant 0 : i32
    %c0_i32_0 = arith.constant 0 : i32
    return %arg0, %c0_i32 : i32, i32
  }
  func.func @transform_1(%arg0: i32) -> (i32, i32) {
    %c0_i32 = arith.constant 0 : i32
    %c0_i32_0 = arith.constant 0 : i32
    return %arg0, %c0_i32 : i32, i32
  }
  func.func @transform_2(%arg0: i32) -> (i32, i32) {
    %c0_i32 = arith.constant 0 : i32
    %c0_i32_0 = arith.constant 0 : i32
    %c0_i32_1 = arith.constant 0 : i32
    return %c0_i32, %c0_i32_0 : i32, i32
  }
  func.func @transform_3(%arg0: i32) -> (i32, i32) {
    %c0_i32 = arith.constant 0 : i32
    %c0_i32_0 = arith.constant 0 : i32
    %c0_i32_1 = arith.constant 0 : i32
    return %c0_i32, %c0_i32_0 : i32, i32
  }
  func.func @transform_4(%arg0: i32) -> (i32, i32) {
    %c0_i32 = arith.constant 0 : i32
    %c0_i32_0 = arith.constant 0 : i32
    %c0_i32_1 = arith.constant 0 : i32
    return %c0_i32, %c0_i32_0 : i32, i32
  }
  func.func @transform_5(%arg0: i32) -> (i32, i32) {
    %c0_i32 = arith.constant 0 : i32
    %c0_i32_0 = arith.constant 0 : i32
    %c0_i32_1 = arith.constant 0 : i32
    return %c0_i32, %c0_i32_0 : i32, i32
  }
  func.func @transform_6(%arg0: i32) -> (i32, i32) {
    %c0_i32 = arith.constant 0 : i32
    %c0_i32_0 = arith.constant 0 : i32
    return %arg0, %c0_i32 : i32, i32
  }
}

</mosaic_0001>

<bundles_post_ra>
// kernel: residual_block_forward.5
= control target key start
LH: loop header
LB: loop body
LE: loop exit
PB: predicated region body
PF: predicated region fallthrough
CT: control target
= control target key end

     0   :  { %s560_s12 = smov 0   ;;  %s646_s0 = inlined_call_operand.vmem [shape: f32[128,128], index: 0, kind: input, shape index: {}]   ;;  %s647_s1 = inlined_call_operand.vmem [shape: f32[128,128], index: 1, kind: input, shape index: {}]   ;;  %s648_s2 = inlined_call_operand.vmem [shape: f32[128,128], index: 2, kind: output, shape index: {0}]   ;;  %s649_s3 = inlined_call_operand.vmem [shape: f32[4,2,128], index: 3, kind: output, shape index: {1}]  }
   0x1 LB: > { %s566_s13 = sadd.s32 4294967295, %s538_s12   ;;  %p410_p0 = scmp.ge.s32.totalorder %s538_s12, 1  ;;  %s538_s12 = sphi %s560_s12, %s14_s12  }
   0x2   : > { %p141_p1 = scmp.lt.s32.totalorder %s538_s12, 5 }
   0x4   : > { %p142_p2 = pnand %p410_p0, %p141_p1 }
   0x5   : > { %v189_v0 = vld [vmem:[%s647_s1] sm:$0xff] (!%p142_p2)  ;;  %v190_v1 = vld [vmem:[%s647_s1 + $0x8] sm:$0xff] (!%p142_p2)  ;;  %v191_v2 = vld [vmem:[%s647_s1 + $0x10] sm:$0xff] (!%p142_p2)  ;;  %s411_s20 = sshll.u32 (!%p142_p2), %s566_s13, 2  ;;  %p181_p4 = scmp.lt.s32.totalorder (!%p142_p2), %s566_s13, 3  ;;  %vm316_vm0 = vcmask (!%p142_p2), 1040384  }
   0x6   : > { %145 = sbr.rel (%p142_p2) target bundleno = 276 (0x114), region = 28  ;;  %v476_v3 = vpack.c.bf16 (!%p142_p2), %v190_v1, %v189_v0  ;;  %v192_v4 = vld [vmem:[%s647_s1 + $0x18] sm:$0xff] (!%p142_p2)  ;;  %p170_p3 = scmp.lt.s32.totalorder (!%p142_p2), %s411_s20, 15  ;;  %v193_v6 = vld [vmem:[%s647_s1 + $0x20] sm:$0xff] (!%p142_p2)  ;;  %v194_v7 = vld [vmem:[%s647_s1 + $0x28] sm:$0xff] (!%p142_p2) }
   0x7   : > { %v480_v5 = vpack.c.bf16 (!%p142_p2), %v192_v4, %v191_v2  ;;  %v484_v8 = vpack.c.bf16 (!%p142_p2), %v194_v7, %v193_v6  ;;  %v195_v9 = vld [vmem:[%s647_s1 + $0x30] sm:$0xff] (!%p142_p2)  ;;  %v196_v10 = vld [vmem:[%s647_s1 + $0x38] sm:$0xff] (!%p142_p2)  ;;  %v197_v14 = vld [vmem:[%s647_s1 + $0x40] sm:$0xff] (!%p142_p2) }
   0x8   : > { %477 = vmatprep.subr.bf16.mxu0 (!%p142_p2), %v476_v3  ;;  %508 = vmatprep.subr.bf16.mxu1 (!%p142_p2), %v476_v3  ;;  %v488_v13 = vpack.c.bf16 (!%p142_p2), %v196_v10, %v195_v9  ;;  %v198_v15 = vld [vmem:[%s647_s1 + $0x48] sm:$0xff] (!%p142_p2)  ;;  %v199_v17 = vld [vmem:[%s647_s1 + $0x50] sm:$0xff] (!%p142_p2)  ;;  %v200_v18 = vld [vmem:[%s647_s1 + $0x58] sm:$0xff] (!%p142_p2) }
   0x9   : > { %479 = vmatpush3.bf16.msra.mxu0 (!%p142_p2), %v476_v3  ;;  %516 = vmatpush3.bf16.msra.mxu1 (!%p142_p2), %v476_v3  ;;  %v492_v16 = vpack.c.bf16 (!%p142_p2), %v198_v15, %v197_v14  ;;  %v496_v19 = vpack.c.bf16 (!%p142_p2), %v200_v18, %v199_v17  ;;  %v201_v20 = vld [vmem:[%s647_s1 + $0x60] sm:$0xff] (!%p142_p2)  ;;  %v202_v21 = vld [vmem:[%s647_s1 + $0x68] sm:$0xff] (!%p142_p2)  ;;  %v203_v23 = vld [vmem:[%s647_s1 + $0x70] sm:$0xff] (!%p142_p2) }
   0xa   : > { %481 = vmatprep.subr.bf16.mxu0 (!%p142_p2), %v480_v5  ;;  %509 = vmatprep.subr.bf16.mxu1 (!%p142_p2), %v480_v5  ;;  %v500_v22 = vpack.c.bf16 (!%p142_p2), %v202_v21, %v201_v20  ;;  %v204_v24 = vld [vmem:[%s647_s1 + $0x78] sm:$0xff] (!%p142_p2) }
   0xb   : > { %v504_v25 = vpack.c.bf16 (!%p142_p2), %v204_v24, %v203_v23 }
   0xd   : > { %s651_s20 = smov (!%p170_p3, %s411_s20), 15  ;;  %483 = vmatpush3.bf16.msra.mxu0 %v480_v5  ;;  %517 = vmatpush3.bf16.msra.mxu1 %v480_v5  ;;  %s653_s13 = smov (!%p181_p4, %s566_s13), 3 }
   0xe   : > { %s412_s27 = sshll.u32 %s651_s20, 3  ;;  %485 = vmatprep.subr.bf16.mxu0 %v484_v8  ;;  %510 = vmatprep.subr.bf16.mxu1 %v484_v8  ;;  %s415_s20 = sshll.u32 %s653_s13, 1 }
   0xf   : > { %s603_s7 = scalar_lea.vmem %s646_s0, %s412_s27  ;;  %s179_s30 = scalar_lea.vmem %s648_s2, %s412_s27 }
  0x10   : > { %v185_v11 = vld [vmem:[%s603_s7] sm:$0xff]  ;;  %v187_v12 = vld [vmem:[%s603_s7 + $0x10] sm:$0xff]  ;;  %v186_v26 = vld [vmem:[%s603_s7 + $0x8] sm:$0xff]  ;;  %s184_s5 = scalar_lea.vmem %s649_s3, %s415_s20 }
  0x11   : > { %470 = vmatprep.mubr.f32.mxu0 %v185_v11  ;;  %473 = vmatprep.mubr.f32.mxu1 %v187_v12  ;;  %v188_v27 = vld [vmem:[%s603_s7 + $0x18] sm:$0xff] }
  0x12   : > { %487 = vmatpush3.bf16.msra.mxu0 %v484_v8  ;;  %518 = vmatpush3.bf16.msra.mxu1 %v484_v8 }
  0x13   : > { %489 = vmatprep.subr.bf16.mxu0 %v488_v13  ;;  %511 = vmatprep.subr.bf16.mxu1 %v488_v13 }
  0x16   : > { %491 = vmatpush3.bf16.msra.mxu0 %v488_v13  ;;  %519 = vmatpush3.bf16.msra.mxu1 %v488_v13 }
  0x17   : > { %493 = vmatprep.subr.bf16.mxu0 %v492_v16  ;;  %512 = vmatprep.subr.bf16.mxu1 %v492_v16 }
  0x1a   : > { %495 = vmatpush3.bf16.msra.mxu0 %v492_v16  ;;  %520 = vmatpush3.bf16.msra.mxu1 %v492_v16 }
  0x1b   : > { %497 = vmatprep.subr.bf16.mxu0 %v496_v19  ;;  %513 = vmatprep.subr.bf16.mxu1 %v496_v19 }
  0x1e   : > { %499 = vmatpush3.bf16.msra.mxu0 %v496_v19  ;;  %521 = vmatpush3.bf16.msra.mxu1 %v496_v19 }
  0x1f   : > { %501 = vmatprep.subr.bf16.mxu0 %v500_v22  ;;  %514 = vmatprep.subr.bf16.mxu1 %v500_v22 }
  0x22   : > { %503 = vmatpush3.bf16.msra.mxu0 %v500_v22  ;;  %522 = vmatpush3.bf16.msra.mxu1 %v500_v22 }
  0x23   : > { %505 = vmatprep.subr.bf16.mxu0 %v504_v25  ;;  %515 = vmatprep.subr.bf16.mxu1 %v504_v25 }
  0x26   : > { %507 = vmatpush3.bf16.msra.mxu0 %v504_v25  ;;  %523 = vmatpush3.bf16.msra.mxu1 %v504_v25 }
  0x29   : > { %471 = vmatmul.mubr.f32.vlgmr.msra.gmra.mrb[0].mxu0 %v186_v26  ;;  %474 = vmatmul.mubr.f32.vlgmr.msra.gmra.mrb[0].mxu1 %v188_v27 }
  0xfc   : > { %v472_v28 = vpop.f32.mrb[0].mxu0  ;;  %v475_v29 = vpop.f32.mrb[0].mxu1 }
  0xfd   : > { %291 = vst [vmem:[%s179_s30 + $0x8] sm:$0xff] %v472_v28  ;;  %v304_v30 = vmul.f32 %v472_v28, %v472_v28  ;;  %v271_v31 = vpop.f32.mrb[1].mxu0  ;;  %293 = vst [vmem:[%s179_s30 + $0x18] sm:$0xff] %v475_v29  ;;  %v281_v32 = vpop.f32.mrb[1].mxu1  ;;  %v306_v38 = vmul.f32 %v475_v29, %v475_v29 }
  0xfe   : > { %290 = vst [vmem:[%s179_s30] sm:$0xff] %v271_v31  ;;  %v294_v33 = vadd.f32 %v472_v28, %v271_v31  ;;  %v303_v34 = vmul.f32 %v271_v31, %v271_v31  ;;  %292 = vst [vmem:[%s179_s30 + $0x10] sm:$0xff] %v281_v32  ;;  %v305_v35 = vmul.f32 %v281_v32, %v281_v32 }
 0x100   : > { %v307_v36 = vadd.f32 %v304_v30, %v303_v34  ;;  %v295_v37 = vadd.f32 %v294_v33, %v281_v32 }
 0x102   : > { %v296_v39 = vadd.f32 %v475_v29, %v295_v37  ;;  %v308_v40 = vadd.f32 %v307_v36, %v305_v35 }
 0x104   : > { %v297_v41 = vrot.slane %v296_v39, 4  ;;  %v309_v42 = vadd.f32 %v308_v40, %v306_v38 }
 0x106   : > { %v298_v43 = vadd.f32 %v297_v41, %v296_v39  ;;  %v310_v44 = vrot.slane %v309_v42, 4 }
 0x108   : > { %v299_v45 = vrot.slane %v298_v43, 2  ;;  %v311_v46 = vadd.f32 %v310_v44, %v309_v42 }
 0x10a   : > { %v300_v47 = vadd.f32 %v299_v45, %v298_v43  ;;  %v312_v48 = vrot.slane %v311_v46, 2 }
 0x10c   : > { %v301_v49 = vrot.slane %v300_v47, 1  ;;  %v313_v50 = vadd.f32 %v312_v48, %v311_v46 }
 0x10e   : > { %v314_v51 = vrot.slane %v313_v50, 1  ;;  %v302_v52 = vadd.f32 %v301_v49, %v300_v47 }
 0x110   : > { %v315_v53 = vadd.f32 %v314_v51, %v313_v50 }
 0x112   : > { %v317_v54 = vsel %vm316_vm0, %v302_v52, %v315_v53 }
 0x113   : > { %318 = vst [vmem:[%s184_s5] sm:$0x3] %v317_v54 }
 0x114 PF: > { %s14_s12 = sadd.s32 1, %s538_s12  }
 0x115   : > { %p11_p5 = scmp.ge.s32.totalorder %s14_s12, 6  }
 0x117   :  { %13 = sbr.rel (!%p11_p5) target bundleno = 1 (0x1), region = 70 }

// kernel: residual_block_forward.6
= control target key start
LH: loop header
LB: loop body
LE: loop exit
PB: predicated region body
PF: predicated region fallthrough
CT: control target
= control target key end

     0   :  { %s313_s12 = smov 0   ;;  %s336_s0 = inlined_call_operand.vmem [shape: f32[128,128], index: 0, kind: input, shape index: {}]   ;;  %s337_s1 = inlined_call_operand.vmem [shape: f32[1,128], index: 1, kind: input, shape index: {}]   ;;  %s338_s2 = inlined_call_operand.vmem [shape: f32[1,128], index: 2, kind: input, shape index: {}]   ;;  %s339_s3 = inlined_call_operand.vmem [shape: f32[128,128], index: 3, kind: output, shape index: {}]  }
   0x1 LB: > { %s264_s13 = sadd.s32 4294967295, %s291_s12   ;;  %p268_p0 = scmp.ge.s32.totalorder %s291_s12, 1  ;;  %s291_s12 = sphi %s313_s12, %s13_s12  }
   0x2   : > { %p138_p1 = scmp.lt.s32.totalorder %s291_s12, 5 }
   0x4   : > { %p139_p2 = pnand %p268_p0, %p138_p1 }
   0x5   : > { %s269_s14 = sshll.u32 (!%p139_p2), %s264_s13, 2  ;;  %v273_v0 = vld [vmem:[%s337_s1] ss:$0 sm:$0xff] (!%p139_p2) }
   0x6   : > { %142 = sbr.rel (%p139_p2) target bundleno = 25 (0x19), region = 32  ;;  %p163_p3 = scmp.lt.s32.totalorder (!%p139_p2), %s269_s14, 15  ;;  %v274_v1 = vld [vmem:[%s338_s2] ss:$0 sm:$0xff] (!%p139_p2) }
   0xd   : > { %s341_s14 = smov (!%p163_p3, %s269_s14), 15 }
   0xe   : > { %s270_s15 = sshll.u32 %s341_s14, 3 }
   0xf   : > { %s166_s20 = scalar_lea.vmem %s336_s0, %s270_s15  ;;  %s172_s25 = scalar_lea.vmem %s339_s3, %s270_s15 }
  0x10   : > { %v174_v2 = vld [vmem:[%s166_s20] sm:$0xff]  ;;  %v175_v3 = vld [vmem:[%s166_s20 + $0x8] sm:$0xff]  ;;  %v176_v4 = vld [vmem:[%s166_s20 + $0x10] sm:$0xff] }
  0x11   : > { %v185_v5 = vmul.f32 %v273_v0, %v174_v2  ;;  %v186_v6 = vmul.f32 %v273_v0, %v175_v3  ;;  %v187_v7 = vmul.f32 %v273_v0, %v176_v4  ;;  %v177_v8 = vld [vmem:[%s166_s20 + $0x18] sm:$0xff] }
  0x12   : > { %v188_v9 = vmul.f32 %v273_v0, %v177_v8 }
  0x13   : > { %v196_v10 = vadd.f32 %v274_v1, %v185_v5  ;;  %v197_v11 = vadd.f32 %v274_v1, %v186_v6  ;;  %v198_v12 = vadd.f32 %v274_v1, %v187_v7 }
  0x14   : > { %v199_v13 = vadd.f32 %v274_v1, %v188_v9 }
  0x15   : > { %v200_v14 = vmax.f32 %v196_v10, 0.0  ;;  %v201_v15 = vmax.f32 %v197_v11, 0.0  ;;  %v202_v16 = vmax.f32 %v198_v12, 0.0 }
  0x16   : > { %v203_v17 = vmax.f32 %v199_v13, 0.0 }
  0x17   : > { %204 = vst [vmem:[%s172_s25] sm:$0xff] %v200_v14  ;;  %205 = vst [vmem:[%s172_s25 + $0x8] sm:$0xff] %v201_v15 }
  0x18   : > { %206 = vst [vmem:[%s172_s25 + $0x10] sm:$0xff] %v202_v16  ;;  %207 = vst [vmem:[%s172_s25 + $0x18] sm:$0xff] %v203_v17 }
  0x19 PF: > { %s13_s12 = sadd.s32 1, %s291_s12  }
  0x1a   : > { %p10_p4 = scmp.ge.s32.totalorder %s13_s12, 6  }
  0x1c   :  { %12 = sbr.rel (!%p10_p4) target bundleno = 1 (0x1), region = 62 }

// kernel: residual_block_forward.9
= control target key start
LH: loop header
LB: loop body
LE: loop exit
PB: predicated region body
PF: predicated region fallthrough
CT: control target
= control target key end

     0   :  { %s477_s21 = smov 0   ;;  %s514_s0 = inlined_call_operand.vmem [shape: f32[128,128], index: 0, kind: input, shape index: {}]   ;;  %s515_s1 = inlined_call_operand.vmem [shape: f32[128,128], index: 1, kind: input, shape index: {}]   ;;  %s516_s2 = inlined_call_operand.vmem [shape: f32[1,128], index: 2, kind: input, shape index: {}]   ;;  %s517_s3 = inlined_call_operand.vmem [shape: f32[1,128], index: 3, kind: input, shape index: {}]   ;;  %s518_s4 = inlined_call_operand.vmem [shape: f32[1,128], index: 4, kind: input, shape index: {}]   ;;  %s519_s5 = inlined_call_operand.vmem [shape: f32[1,128], index: 5, kind: input, shape index: {}]   ;;  %s520_s6 = inlined_call_operand.vmem [shape: f32[128,128], index: 6, kind: output, shape index: {}]  }
   0x1 LB: > { %s409_s22 = sadd.s32 4294967295, %s440_s21   ;;  %p413_p0 = scmp.ge.s32.totalorder %s440_s21, 1  ;;  %s440_s21 = sphi %s477_s21, %s16_s21  }
   0x2   : > { %p224_p1 = scmp.lt.s32.totalorder %s440_s21, 5 }
   0x4   : > { %p225_p2 = pnand %p413_p0, %p224_p1 }
   0x5   : > { %s414_s23 = sshll.u32 (!%p225_p2), %s409_s22, 2  ;;  %v420_v0 = vld [vmem:[%s516_s2] ss:$0 sm:$0xff] (!%p225_p2) }
   0x6   : > { %228 = sbr.rel (%p225_p2) target bundleno = 29 (0x1d), region = 44  ;;  %p260_p3 = scmp.lt.s32.totalorder (!%p225_p2), %s414_s23, 15  ;;  %v422_v1 = vld [vmem:[%s518_s4] ss:$0 sm:$0xff] (!%p225_p2) }
   0x7   : > { %v421_v2 = vld [vmem:[%s517_s3] ss:$0 sm:$0xff] (!%p225_p2) }
   0x8   : > { %v423_v3 = vld [vmem:[%s519_s5] ss:$0 sm:$0xff] (!%p225_p2) }
   0xd   : > { %s522_s23 = smov (!%p260_p3, %s414_s23), 15 }
   0xe   : > { %s485_s24 = sshll.u32 %s522_s23, 3 }
   0xf   : > { %s263_s7 = scalar_lea.vmem %s514_s0, %s485_s24  ;;  %s269_s10 = scalar_lea.vmem %s515_s1, %s485_s24 }
  0x10   : > { %v277_v4 = vld [vmem:[%s263_s7] sm:$0xff]  ;;  %v278_v6 = vld [vmem:[%s263_s7 + $0x8] sm:$0xff]  ;;  %v279_v11 = vld [vmem:[%s263_s7 + $0x10] sm:$0xff]  ;;  %s275_s17 = scalar_lea.vmem %s520_s6, %s485_s24 }
  0x11   : > { %v303_v5 = vld [vmem:[%s269_s10] sm:$0xff]  ;;  %v288_v7 = vmul.f32 %v420_v0, %v277_v4  ;;  %v289_v9 = vmul.f32 %v420_v0, %v278_v6  ;;  %v304_v10 = vld [vmem:[%s269_s10 + $0x8] sm:$0xff]  ;;  %v305_v12 = vld [vmem:[%s269_s10 + $0x10] sm:$0xff]  ;;  %v290_v14 = vmul.f32 %v420_v0, %v279_v11 }
  0x12   : > { %v314_v8 = vmul.f32 %v422_v1, %v303_v5  ;;  %v315_v13 = vmul.f32 %v422_v1, %v304_v10  ;;  %v316_v15 = vmul.f32 %v422_v1, %v305_v12  ;;  %v280_v16 = vld [vmem:[%s263_s7 + $0x18] sm:$0xff] }
  0x13   : > { %v306_v17 = vld [vmem:[%s269_s10 + $0x18] sm:$0xff]  ;;  %v299_v18 = vadd.f32 %v421_v2, %v288_v7  ;;  %v300_v20 = vadd.f32 %v421_v2, %v289_v9  ;;  %v291_v21 = vmul.f32 %v420_v0, %v280_v16  ;;  %v301_v23 = vadd.f32 %v421_v2, %v290_v14 }
  0x14   : > { %v325_v19 = vadd.f32 %v423_v3, %v314_v8  ;;  %v326_v22 = vadd.f32 %v423_v3, %v315_v13  ;;  %v327_v24 = vadd.f32 %v423_v3, %v316_v15  ;;  %v317_v25 = vmul.f32 %v422_v1, %v306_v17 }
  0x15   : > { %v302_v27 = vadd.f32 %v421_v2, %v291_v21 }
  0x16   : > { %v329_v26 = vadd.f32 %v325_v19, %v299_v18  ;;  %v330_v28 = vadd.f32 %v326_v22, %v300_v20  ;;  %v331_v29 = vadd.f32 %v327_v24, %v301_v23  ;;  %v328_v30 = vadd.f32 %v423_v3, %v317_v25 }
  0x18   : > { %v333_v31 = vmax.f32 %v329_v26, 0.0  ;;  %v334_v32 = vmax.f32 %v330_v28, 0.0  ;;  %v335_v33 = vmax.f32 %v331_v29, 0.0  ;;  %v332_v34 = vadd.f32 %v328_v30, %v302_v27 }
  0x1a   : > { %337 = vst [vmem:[%s275_s17] sm:$0xff] %v333_v31  ;;  %338 = vst [vmem:[%s275_s17 + $0x8] sm:$0xff] %v334_v32  ;;  %v336_v35 = vmax.f32 %v332_v34, 0.0 }
  0x1b   : > { %339 = vst [vmem:[%s275_s17 + $0x10] sm:$0xff] %v335_v33 }
  0x1c   : > { %340 = vst [vmem:[%s275_s17 + $0x18] sm:$0xff] %v336_v35 }
  0x1d PF: > { %s16_s21 = sadd.s32 1, %s440_s21  }
  0x1e   : > { %p13_p4 = scmp.ge.s32.totalorder %s16_s21, 6  }
  0x20   :  { %15 = sbr.rel (!%p13_p4) target bundleno = 1 (0x1), region = 77 }

</bundles_post_ra>
